<compile_context>
chip_gen: v6e
topology: v6e:2x2x1
jax: 0.10.0
libtpu: 0.0.40
codegen_flags: <defaults>
</compile_context>

<pallas_src>
import jax
import jax.numpy as jnp
from jax.experimental import pallas as pl
from jax.experimental.pallas import tpu as pltpu


def _inverse_model_kernel(x1_ref, x2_ref,
                          w1a_ref, w1b_ref, b1_ref,
                          w2_ref, b2_ref,
                          w3_ref, b3_ref,
                          w4_ref, b4_ref,
                          o_ref):
    """Fused 4-layer MLP: relu(fc1) -> relu(fc2) -> relu(fc3) -> fc4.

    fc1 is computed as x1 @ W1a + x2 @ W1b (== cat(x1, x2) @ W1).  Input tiles
    arrive in f32 and are cast to bf16 here (saves a separate XLA convert pass
    over HBM); matmul inputs are bf16, accumulation is f32, biases are f32.
    """
    x1 = x1_ref[...].astype(jnp.bfloat16)
    x2 = x2_ref[...].astype(jnp.bfloat16)

    # fc1 + relu   (TB, D) @ (D, 256) twice, summed in fp32
    h = (jnp.dot(x1, w1a_ref[...], preferred_element_type=jnp.float32)
         + jnp.dot(x2, w1b_ref[...], preferred_element_type=jnp.float32)
         + b1_ref[...])
    h = jnp.maximum(h, 0.0).astype(jnp.bfloat16)

    # fc2 + relu   (TB, 256) @ (256, 128)
    h = jnp.dot(h, w2_ref[...], preferred_element_type=jnp.float32) + b2_ref[...]
    h = jnp.maximum(h, 0.0).astype(jnp.bfloat16)

    # fc3 + relu   (TB, 128) @ (128, 64)
    h = jnp.dot(h, w3_ref[...], preferred_element_type=jnp.float32) + b3_ref[...]
    h = jnp.maximum(h, 0.0).astype(jnp.bfloat16)

    # TODO(synk): nn.Dropout(0.5) is identity in eval mode; training-mode masking
    # (pltpu.prng_seed + pltpu.prng_random_bits) is not implemented here.

    # fc4 (logits) (TB, 64) @ (64, num_actions)
    out = jnp.dot(h, w4_ref[...], preferred_element_type=jnp.float32) + b4_ref[...]
    o_ref[...] = out.astype(o_ref.dtype)


def _round_up(n, m):
    return ((n + m - 1) // m) * m


def _choose_tiling(B):
    """Pick (TB, B_pad).

    * TB <= 512: big enough to amortize per-grid-step overhead, small enough
      that two double-buffered f32 input tiles (+ weights/outputs) stay well
      under v5e's 16 MiB default scoped VMEM (v6e/v7x have 32 MiB).
    * 16-aligned (bf16 sublane packing / full MXU rows); 8-aligned for tiny B
      so we don't pad a tiny batch just for alignment.
    * >= 2 (even) grid steps for B >= 256 so the "parallel" axis actually
      shards across v7x's two TensorCores.
    * TB adapted to B so zero-row padding stays within one alignment group.
    """
    TB_MAX = 512
    align = 8 if B < 32 else 16
    if B < 256 and B <= TB_MAX:
        TB = _round_up(B, align)
        return TB, TB
    n_steps = max(2, -(-B // TB_MAX))          # ceil(B / TB_MAX), at least 2
    if n_steps % 2:
        n_steps += 1                           # even step count balances 2 TCs
    TB = _round_up(-(-B // n_steps), align)    # ceil(B / n_steps), aligned
    return TB, _round_up(B, TB)


@jax.jit
def inverse_model_forward(x1, x2, params):
    """x1, x2: (B, encoder_dim) siamese encoder outputs (f32 or bf16).

    Equivalent to the PyTorch module's forward(torch.cat([x1, x2], dim=1)).
    Returns (B, num_actions) fp32 logits.
    """
    B, D = x1.shape
    A = params["w4"].shape[1]

    TB, B_pad = _choose_tiling(B)
    if B_pad != B:
        pad = ((0, B_pad - B), (0, 0))
        x1 = jnp.pad(x1, pad)
        x2 = jnp.pad(x2, pad)

    w1a, w1b = params["w1a"], params["w1b"]
    b1 = params["b1"]
    w2, b2 = params["w2"], params["b2"]
    w3, b3 = params["w3"], params["b3"]
    w4, b4 = params["w4"], params["b4"]

    x_spec = pl.BlockSpec((TB, D), lambda i: (i, 0))
    out_spec = pl.BlockSpec((TB, A), lambda i: (i, 0))

    def _const(shape):
        # Same block every grid step -> weights/biases stay resident in VMEM.
        return pl.BlockSpec(shape, lambda i: (0, 0))

    out = pl.pallas_call(
        _inverse_model_kernel,
        out_shape=jax.ShapeDtypeStruct((B_pad, A), jnp.float32),
        grid=(B_pad // TB,),
        in_specs=[
            x_spec, x_spec,
            _const(w1a.shape), _const(w1b.shape), _const(b1.shape),
            _const(w2.shape), _const(b2.shape),
            _const(w3.shape), _const(b3.shape),
            _const(w4.shape), _const(b4.shape),
        ],
        out_specs=out_spec,
        compiler_params=pltpu.CompilerParams(
            dimension_semantics=("parallel",)),
    )(x1, x2, w1a, w1b, b1, w2, b2, w3, b3, w4, b4)

    return out if B_pad == B else out[:B]


def init_params(key, encoder_dim=400, num_actions=5, weight_dtype=jnp.bfloat16):
    """PyTorch-style Linear init: U(-1/sqrt(fan_in), 1/sqrt(fan_in)).

    Weights stored (in, out) in bf16 (fc1 split row-wise into w1a / w1b);
    biases kept (1, out) fp32 so they add into the fp32 accumulator.
    NOTE: loading real nn.Linear weights requires transposing (out, in)->(in, out).
    """
    dims = [(encoder_dim * 2, 256), (256, 128), (128, 64), (64, num_actions)]
    params = {}
    for i, (fan_in, fan_out) in enumerate(dims, start=1):
        key, kw, kb = jax.random.split(key, 3)
        bound = 1.0 / float(fan_in) ** 0.5
        w = jax.random.uniform(kw, (fan_in, fan_out), jnp.float32,
                               minval=-bound, maxval=bound)
        b = jax.random.uniform(kb, (1, fan_out), jnp.float32,
                               minval=-bound, maxval=bound)
        if i == 1:
            params["w1a"] = w[:encoder_dim].astype(weight_dtype)
            params["w1b"] = w[encoder_dim:].astype(weight_dtype)
        else:
            params[f"w{i}"] = w.astype(weight_dtype)
        params[f"b{i}"] = b
    return params


def _reference_forward(x1, x2, params):
    """Pure-JAX reference with identical numerics (bf16 matmul inputs, f32 accum)."""
    x = jnp.concatenate([x1, x2], axis=1).astype(jnp.bfloat16)
    w1 = jnp.concatenate([params["w1a"], params["w1b"]], axis=0)
    h = jnp.dot(x, w1, preferred_element_type=jnp.float32) + params["b1"]
    h = jnp.maximum(h, 0.0).astype(jnp.bfloat16)
    h = jnp.dot(h, params["w2"], preferred_element_type=jnp.float32) + params["b2"]
    h = jnp.maximum(h, 0.0).astype(jnp.bfloat16)
    h = jnp.dot(h, params["w3"], preferred_element_type=jnp.float32) + params["b3"]
    h = jnp.maximum(h, 0.0).astype(jnp.bfloat16)
    return jnp.dot(h, params["w4"], preferred_element_type=jnp.float32) + params["b4"]


if __name__ == "__main__":
    encoder_dim = 400
    num_actions = 5
    batch = 8

    key = jax.random.PRNGKey(0)
    key, k1, k2 = jax.random.split(key, 3)
    params = init_params(key, encoder_dim=encoder_dim, num_actions=num_actions)
    # The siamese encoder produces two (B, encoder_dim) embeddings; the PyTorch
    # module consumes their concatenation — here we pass them separately and the
    # kernel folds the concat into fc1.
    x1 = jax.random.normal(k1, (batch, encoder_dim), dtype=jnp.float32)
    x2 = jax.random.normal(k2, (batch, encoder_dim), dtype=jnp.float32)

    out = inverse_model_forward(x1, x2, params)
    out = jax.block_until_ready(out)

    ref = _reference_forward(x1, x2, params)
    assert out.shape == (batch, num_actions), out.shape
    assert jnp.allclose(out, ref, atol=2e-2, rtol=2e-2), "mismatch vs reference"

    print("KERNEL_OK")
</pallas_src>

<mosaic_0001>
module attributes {stable_mosaic.version = 11 : i64} {
  func.func @_inverse_model_kernel(%arg0: i32, %arg1: memref<8x400xf32, #tpu.memory_space<vmem>>, %arg2: memref<8x400xf32, #tpu.memory_space<vmem>>, %arg3: memref<400x256xbf16, #tpu.memory_space<vmem>>, %arg4: memref<400x256xbf16, #tpu.memory_space<vmem>>, %arg5: memref<1x256xf32, #tpu.memory_space<vmem>>, %arg6: memref<256x128xbf16, #tpu.memory_space<vmem>>, %arg7: memref<1x128xf32, #tpu.memory_space<vmem>>, %arg8: memref<128x64xbf16, #tpu.memory_space<vmem>>, %arg9: memref<1x64xf32, #tpu.memory_space<vmem>>, %arg10: memref<64x5xbf16, #tpu.memory_space<vmem>>, %arg11: memref<1x5xf32, #tpu.memory_space<vmem>>, %arg12: memref<8x5xf32, #tpu.memory_space<vmem>>) attributes {dimension_semantics = [#tpu.dimension_semantics<parallel>], iteration_bounds = array<i64: 1>, scalar_prefetch = 0 : i64, scratch_operands = 0 : i64, tpu.core_type = #tpu.core_type<tc>, window_params = [{transform_indices = @transform_0, window_bounds = array<i64: 8, 400>}, {transform_indices = @transform_1, window_bounds = array<i64: 8, 400>}, {pipeline_mode = #tpu.pipeline_mode<synchronous>, transform_indices = @transform_2, window_bounds = array<i64: 400, 256>}, {pipeline_mode = #tpu.pipeline_mode<synchronous>, transform_indices = @transform_3, window_bounds = array<i64: 400, 256>}, {pipeline_mode = #tpu.pipeline_mode<synchronous>, transform_indices = @transform_4, window_bounds = array<i64: 1, 256>}, {pipeline_mode = #tpu.pipeline_mode<synchronous>, transform_indices = @transform_5, window_bounds = array<i64: 256, 128>}, {pipeline_mode = #tpu.pipeline_mode<synchronous>, transform_indices = @transform_6, window_bounds = array<i64: 1, 128>}, {pipeline_mode = #tpu.pipeline_mode<synchronous>, transform_indices = @transform_7, window_bounds = array<i64: 128, 64>}, {pipeline_mode = #tpu.pipeline_mode<synchronous>, transform_indices = @transform_8, window_bounds = array<i64: 1, 64>}, {pipeline_mode = #tpu.pipeline_mode<synchronous>, transform_indices = @transform_9, window_bounds = array<i64: 64, 5>}, {pipeline_mode = #tpu.pipeline_mode<synchronous>, transform_indices = @transform_10, window_bounds = array<i64: 1, 5>}, {transform_indices = @transform_11, window_bounds = array<i64: 8, 5>}]} {
    %c0 = arith.constant 0 : index
    %c0_0 = arith.constant 0 : index
    %0 = vector.load %arg1[%c0, %c0_0] : memref<8x400xf32, #tpu.memory_space<vmem>>, vector<8x400xf32>
    %1 = arith.truncf %0 : vector<8x400xf32> to vector<8x400xbf16>
    %c0_1 = arith.constant 0 : index
    %c0_2 = arith.constant 0 : index
    %2 = vector.load %arg2[%c0_1, %c0_2] : memref<8x400xf32, #tpu.memory_space<vmem>>, vector<8x400xf32>
    %3 = arith.truncf %2 : vector<8x400xf32> to vector<8x400xbf16>
    %c0_3 = arith.constant 0 : index
    %c0_4 = arith.constant 0 : index
    %4 = vector.load %arg3[%c0_3, %c0_4] : memref<400x256xbf16, #tpu.memory_space<vmem>>, vector<400x256xbf16>
    %cst = arith.constant dense<0.000000e+00> : vector<8x256xf32>
    %5 = tpu.matmul %1, %4, %cst {dimension_numbers = #tpu.dot_dimension_numbers<[1], [0], [0], [1], [0, 0, 1, 1], [], []>} : vector<8x400xbf16>, vector<400x256xbf16>, vector<8x256xf32> -> vector<8x256xf32>
    %c0_5 = arith.constant 0 : index
    %c0_6 = arith.constant 0 : index
    %6 = vector.load %arg4[%c0_5, %c0_6] : memref<400x256xbf16, #tpu.memory_space<vmem>>, vector<400x256xbf16>
    %cst_7 = arith.constant dense<0.000000e+00> : vector<8x256xf32>
    %7 = tpu.matmul %3, %6, %cst_7 {dimension_numbers = #tpu.dot_dimension_numbers<[1], [0], [0], [1], [0, 0, 1, 1], [], []>} : vector<8x400xbf16>, vector<400x256xbf16>, vector<8x256xf32> -> vector<8x256xf32>
    %8 = arith.addf %5, %7 : vector<8x256xf32>
    %c0_8 = arith.constant 0 : index
    %c0_9 = arith.constant 0 : index
    %9 = vector.load %arg5[%c0_8, %c0_9] : memref<1x256xf32, #tpu.memory_space<vmem>>, vector<1x256xf32>
    %10 = vector.broadcast %9 : vector<1x256xf32> to vector<8x256xf32>
    %11 = arith.addf %8, %10 : vector<8x256xf32>
    %cst_10 = arith.constant 0.000000e+00 : f32
    %12 = vector.broadcast %cst_10 : f32 to vector<8x256xf32>
    %13 = arith.maximumf %11, %12 : vector<8x256xf32>
    %14 = arith.truncf %13 : vector<8x256xf32> to vector<8x256xbf16>
    %c0_11 = arith.constant 0 : index
    %c0_12 = arith.constant 0 : index
    %15 = vector.load %arg6[%c0_11, %c0_12] : memref<256x128xbf16, #tpu.memory_space<vmem>>, vector<256x128xbf16>
    %cst_13 = arith.constant dense<0.000000e+00> : vector<8x128xf32>
    %16 = tpu.matmul %14, %15, %cst_13 {dimension_numbers = #tpu.dot_dimension_numbers<[1], [0], [0], [1], [0, 0, 1, 1], [], []>} : vector<8x256xbf16>, vector<256x128xbf16>, vector<8x128xf32> -> vector<8x128xf32>
    %c0_14 = arith.constant 0 : index
    %c0_15 = arith.constant 0 : index
    %17 = vector.load %arg7[%c0_14, %c0_15] : memref<1x128xf32, #tpu.memory_space<vmem>>, vector<1x128xf32>
    %18 = vector.broadcast %17 : vector<1x128xf32> to vector<8x128xf32>
    %19 = arith.addf %16, %18 : vector<8x128xf32>
    %cst_16 = arith.constant 0.000000e+00 : f32
    %20 = vector.broadcast %cst_16 : f32 to vector<8x128xf32>
    %21 = arith.maximumf %19, %20 : vector<8x128xf32>
    %22 = arith.truncf %21 : vector<8x128xf32> to vector<8x128xbf16>
    %c0_17 = arith.constant 0 : index
    %c0_18 = arith.constant 0 : index
    %23 = vector.load %arg8[%c0_17, %c0_18] : memref<128x64xbf16, #tpu.memory_space<vmem>>, vector<128x64xbf16>
    %cst_19 = arith.constant dense<0.000000e+00> : vector<8x64xf32>
    %24 = tpu.matmul %22, %23, %cst_19 {dimension_numbers = #tpu.dot_dimension_numbers<[1], [0], [0], [1], [0, 0, 1, 1], [], []>} : vector<8x128xbf16>, vector<128x64xbf16>, vector<8x64xf32> -> vector<8x64xf32>
    %c0_20 = arith.constant 0 : index
    %c0_21 = arith.constant 0 : index
    %25 = vector.load %arg9[%c0_20, %c0_21] : memref<1x64xf32, #tpu.memory_space<vmem>>, vector<1x64xf32>
    %26 = vector.broadcast %25 : vector<1x64xf32> to vector<8x64xf32>
    %27 = arith.addf %24, %26 : vector<8x64xf32>
    %cst_22 = arith.constant 0.000000e+00 : f32
    %28 = vector.broadcast %cst_22 : f32 to vector<8x64xf32>
    %29 = arith.maximumf %27, %28 : vector<8x64xf32>
    %30 = arith.truncf %29 : vector<8x64xf32> to vector<8x64xbf16>
    %c0_23 = arith.constant 0 : index
    %c0_24 = arith.constant 0 : index
    %31 = vector.load %arg10[%c0_23, %c0_24] : memref<64x5xbf16, #tpu.memory_space<vmem>>, vector<64x5xbf16>
    %cst_25 = arith.constant dense<0.000000e+00> : vector<8x5xf32>
    %32 = tpu.matmul %30, %31, %cst_25 {dimension_numbers = #tpu.dot_dimension_numbers<[1], [0], [0], [1], [0, 0, 1, 1], [], []>} : vector<8x64xbf16>, vector<64x5xbf16>, vector<8x5xf32> -> vector<8x5xf32>
    %c0_26 = arith.constant 0 : index
    %c0_27 = arith.constant 0 : index
    %33 = vector.load %arg11[%c0_26, %c0_27] : memref<1x5xf32, #tpu.memory_space<vmem>>, vector<1x5xf32>
    %34 = vector.broadcast %33 : vector<1x5xf32> to vector<8x5xf32>
    %35 = arith.addf %32, %34 : vector<8x5xf32>
    %c0_28 = arith.constant 0 : index
    %c0_29 = arith.constant 0 : index
    %36 = vector.load %arg12[%c0_28, %c0_29] : memref<8x5xf32, #tpu.memory_space<vmem>>, vector<8x5xf32>
    tpu.vector_store %arg12[%c0_28, %c0_29], %35 {strides = array<i32>} : memref<8x5xf32, #tpu.memory_space<vmem>>, vector<8x5xf32>,
    return
  }
  func.func @transform_0(%arg0: i32) -> (i32, i32) {
    %c0_i32 = arith.constant 0 : i32
    %c0_i32_0 = arith.constant 0 : i32
    return %arg0, %c0_i32 : i32, i32
  }
  func.func @transform_1(%arg0: i32) -> (i32, i32) {
    %c0_i32 = arith.constant 0 : i32
    %c0_i32_0 = arith.constant 0 : i32
    return %arg0, %c0_i32 : i32, i32
  }
  func.func @transform_2(%arg0: i32) -> (i32, i32) {
    %c0_i32 = arith.constant 0 : i32
    %c0_i32_0 = arith.constant 0 : i32
    %c0_i32_1 = arith.constant 0 : i32
    return %c0_i32, %c0_i32_0 : i32, i32
  }
  func.func @transform_3(%arg0: i32) -> (i32, i32) {
    %c0_i32 = arith.constant 0 : i32
    %c0_i32_0 = arith.constant 0 : i32
    %c0_i32_1 = arith.constant 0 : i32
    return %c0_i32, %c0_i32_0 : i32, i32
  }
  func.func @transform_4(%arg0: i32) -> (i32, i32) {
    %c0_i32 = arith.constant 0 : i32
    %c0_i32_0 = arith.constant 0 : i32
    %c0_i32_1 = arith.constant 0 : i32
    return %c0_i32, %c0_i32_0 : i32, i32
  }
  func.func @transform_5(%arg0: i32) -> (i32, i32) {
    %c0_i32 = arith.constant 0 : i32
    %c0_i32_0 = arith.constant 0 : i32
    %c0_i32_1 = arith.constant 0 : i32
    return %c0_i32, %c0_i32_0 : i32, i32
  }
  func.func @transform_6(%arg0: i32) -> (i32, i32) {
    %c0_i32 = arith.constant 0 : i32
    %c0_i32_0 = arith.constant 0 : i32
    %c0_i32_1 = arith.constant 0 : i32
    return %c0_i32, %c0_i32_0 : i32, i32
  }
  func.func @transform_7(%arg0: i32) -> (i32, i32) {
    %c0_i32 = arith.constant 0 : i32
    %c0_i32_0 = arith.constant 0 : i32
    %c0_i32_1 = arith.constant 0 : i32
    return %c0_i32, %c0_i32_0 : i32, i32
  }
  func.func @transform_8(%arg0: i32) -> (i32, i32) {
    %c0_i32 = arith.constant 0 : i32
    %c0_i32_0 = arith.constant 0 : i32
    %c0_i32_1 = arith.constant 0 : i32
    return %c0_i32, %c0_i32_0 : i32, i32
  }
  func.func @transform_9(%arg0: i32) -> (i32, i32) {
    %c0_i32 = arith.constant 0 : i32
    %c0_i32_0 = arith.constant 0 : i32
    %c0_i32_1 = arith.constant 0 : i32
    return %c0_i32, %c0_i32_0 : i32, i32
  }
  func.func @transform_10(%arg0: i32) -> (i32, i32) {
    %c0_i32 = arith.constant 0 : i32
    %c0_i32_0 = arith.constant 0 : i32
    %c0_i32_1 = arith.constant 0 : i32
    return %c0_i32, %c0_i32_0 : i32, i32
  }
  func.func @transform_11(%arg0: i32) -> (i32, i32) {
    %c0_i32 = arith.constant 0 : i32
    %c0_i32_0 = arith.constant 0 : i32
    return %arg0, %c0_i32 : i32, i32
  }
}

</mosaic_0001>

<bundles_post_ra>
// kernel: inverse_model_forward.1
= control target key start
LH: loop header
LB: loop body
LE: loop exit
PB: predicated region body
PF: predicated region fallthrough
CT: control target
= control target key end

     0   :  { %16 = vsyncpa [#allocation3], 0  ;;  %s1981_s0 = inlined_call_operand.hbm [shape: f32[8,400], index: 0, kind: input, shape index: {}]   ;;  %s1982_s1 = inlined_call_operand.hbm [shape: f32[8,400], index: 1, kind: input, shape index: {}]   ;;  %s1983_s2 = inlined_call_operand.hbm [shape: bf16[400,256], index: 2, kind: input, shape index: {}]   ;;  %s1984_s3 = inlined_call_operand.hbm [shape: bf16[400,256], index: 3, kind: input, shape index: {}]   ;;  %s1985_s4 = inlined_call_operand.vmem [shape: f32[1,256], index: 4, kind: input, shape index: {}]   ;;  %s1986_s5 = inlined_call_operand.vmem [shape: bf16[256,128], index: 5, kind: input, shape index: {}]   ;;  %s1987_s6 = inlined_call_operand.vmem [shape: f32[1,128], index: 6, kind: input, shape index: {}]   ;;  %s1988_s7 = inlined_call_operand.vmem [shape: bf16[128,64], index: 7, kind: input, shape index: {}]   ;;  %s1989_s8 = inlined_call_operand.vmem [shape: f32[1,64], index: 8, kind: input, shape index: {}]   ;;  %s1990_s9 = inlined_call_operand.vmem [shape: bf16[64,5], index: 9, kind: input, shape index: {}]   ;;  %s1991_s10 = inlined_call_operand.vmem [shape: f32[1,5], index: 10, kind: input, shape index: {}]   ;;  %s1992_s11 = inlined_call_operand.hbm [shape: f32[8,5], index: 11, kind: output, shape index: {}]  }
   0x1   :  { %17 = vsyncpa [#allocation6], 0 }
   0x2   :  { %18 = vsyncpa [#allocation9], 0 }
   0x3   :  { %19 = vsyncpa [#allocation4], 0  ;;  %s1785_s17 = smov [#allocation5]   ;;  %s1786_s19 = smov [#allocation2]  }
   0x4   :  { %s36_s18 = sshll.u32 %s1785_s17, 4  ;;  %s26_s20 = sshll.u32 %s1786_s19, 4  ;;  %s37_s18 = int_to_ptr.vmem [resolvable:$true] %s36_s18  ;;  %s27_s20 = int_to_ptr.vmem [resolvable:$true] %s26_s20 }
   0x5   :  { %s1685_s21 = scalar_lea.vmem %s37_s18, 512  ;;  %p1690_p1 = scmp.lt.s32.totalorder %s37_s18, %s37_s18 }
   0x6   :  { %p1686_p0 = scmp.ne.s32.totalorder %s37_s18, %s1685_s21  ;;  %p1691_p2 = scmp.lt.s32.totalorder %s1685_s21, %s1685_s21 }
   0x8   :  { %p1692_p3 = por %p1691_p2, %p1690_p1 }
   0xa   :  { %p1693_p4 = pnand %p1692_p3, %p1686_p0 }
   0xc   :  { %1696 = shalt.err (!%p1693_p4)
}
   0xd   :  { %39 = dma.hbm_to_vmem [thread:$0]  %s1982_s1, 512, %s37_s18, [#allocation6]  }
   0xe   :  { %s1705_s24 = scalar_lea.vmem %s27_s20, 512  ;;  %p1710_p6 = scmp.lt.s32.totalorder %s27_s20, %s27_s20 }
   0xf   :  { %p1706_p5 = scmp.ne.s32.totalorder %s27_s20, %s1705_s24  ;;  %p1711_p7 = scmp.lt.s32.totalorder %s1705_s24, %s1705_s24 }
  0x11   :  { %p1712_p8 = por %p1711_p7, %p1710_p6 }
  0x13   :  { %p1713_p9 = pnand %p1712_p8, %p1706_p5 }
  0x15   :  { %1716 = shalt.err (!%p1713_p9)
}
  0x16   :  { %29 = dma.hbm_to_vmem [thread:$0]  %s1981_s0, 512, %s27_s20, [#allocation3]  }
  0x17   :  { %s1787_s27 = smov [#allocation7]  }
  0x18   :  { %s45_s28 = sshll.u32 %s1787_s27, 4  ;;  %s46_s28 = int_to_ptr.vmem [resolvable:$true] %s45_s28 }
  0x19   :  { %s1725_s29 = scalar_lea.vmem %s46_s28, 6400  ;;  %p1730_p11 = scmp.lt.s32.totalorder %s46_s28, %s46_s28 }
  0x1a   :  { %p1726_p10 = scmp.ne.s32.totalorder %s46_s28, %s1725_s29  ;;  %p1731_p12 = scmp.lt.s32.totalorder %s1725_s29, %s1725_s29 }
  0x1c   :  { %p1732_p13 = por %p1731_p12, %p1730_p11 }
  0x1e   :  { %p1733_p0 = pnand %p1732_p13, %p1726_p10 }
  0x20   :  { %1736 = shalt.err (!%p1733_p0)
}
  0x21   :  { %s1788_s1 = smov 128   ;;  %s1789_s30 = smov 8  }
  0x22   :  { %51 = dma.hbm_to_vmem [thread:$0]  %s1983_s2, 6400, %s46_s28, [#allocation6], %s1788_s1, %s1788_s1, %s1789_s30  }
  0x23   :  { %s1790_s14 = smov [#allocation8]  }
  0x24   :  { %s57_s15 = sshll.u32 %s1790_s14, 4  ;;  %s58_s15 = int_to_ptr.vmem [resolvable:$true] %s57_s15 }
  0x25   :  { %s1745_s0 = scalar_lea.vmem %s58_s15, 6400  ;;  %p1750_p2 = scmp.lt.s32.totalorder %s58_s15, %s58_s15 }
  0x26   :  { %p1746_p1 = scmp.ne.s32.totalorder %s58_s15, %s1745_s0  ;;  %p1751_p3 = scmp.lt.s32.totalorder %s1745_s0, %s1745_s0 }
  0x28   :  { %p1752_p4 = por %p1751_p3, %p1750_p2 }
  0x2a   :  { %p1753_p5 = pnand %p1752_p4, %p1746_p1 }
  0x2c   :  { %1756 = shalt.err (!%p1753_p5)
}
  0x2d   :  { %63 = dma.hbm_to_vmem [thread:$0]  %s1984_s3, 6400, %s58_s15, [#allocation9], %s1788_s1, %s1788_s1, %s1789_s30  }
  0x2e   :  { %1777 = dma.done.wait [#allocation3], 512  }
  0x2f   :  { %1778 = vsyncadd [#allocation3], 4294966784 }
  0x30   :  { %1779 = dma.done.wait [#allocation6], 6912  }
  0x31   :  { %1780 = vsyncadd [#allocation6], 4294960384 }
  0x32   :  { %1781 = dma.done.wait [#allocation9], 6400  }
  0x33   :  { %1782 = vsyncadd [#allocation9], 4294960896  ;;  %v1499_v0 = vld [vmem:[#allocation8 + $0x74] ss:$8 sps:$4 sm:$0xff]   ;;  %v1503_v2 = vld [vmem:[#allocation8 + $0x70] ss:$8 sps:$4 sm:$0xff]  }
  0x34   :  { %v1501_v1 = vld [vmem:[#allocation8 + $0x174] ss:$8 sps:$4 sm:$0xff]   ;;  %461 = vmatprep.subr.bf16.mxu0 %v1499_v0  ;;  %v1504_v3 = vld [vmem:[#allocation8 + $0x170] ss:$8 sps:$4 sm:$0xff]   ;;  %v1505_v4 = vld [vmem:[#allocation8 + $0x64] ss:$8 sps:$4 sm:$0xff]  }
  0x35   :  { %502 = vmatprep.subr.bf16.mxu1 %v1501_v1  ;;  %462 = vmatpush1.bf16.msra.mxu0 %v1503_v2  ;;  %v1507_v5 = vld [vmem:[#allocation8 + $0x164] ss:$8 sps:$4 sm:$0xff]   ;;  %v1509_v6 = vld [vmem:[#allocation8 + $0x60] ss:$8 sps:$4 sm:$0xff]   ;;  %v1511_v8 = vld [vmem:[#allocation8 + $0x54] ss:$8 sps:$4 sm:$0xff]  }
  0x36   :  { %503 = vmatpush1.bf16.msra.mxu1 %v1504_v3  ;;  %463 = vmatprep.subr.bf16.mxu0 %v1505_v4  ;;  %v1510_v7 = vld [vmem:[#allocation8 + $0x160] ss:$8 sps:$4 sm:$0xff]   ;;  %v1513_v9 = vld [vmem:[#allocation8 + $0x154] ss:$8 sps:$4 sm:$0xff]   ;;  %v1515_v10 = vld [vmem:[#allocation8 + $0x50] ss:$8 sps:$4 sm:$0xff]  }
  0x37   :  { %504 = vmatprep.subr.bf16.mxu1 %v1507_v5  ;;  %v1516_v11 = vld [vmem:[#allocation8 + $0x150] ss:$8 sps:$4 sm:$0xff]   ;;  %v1517_v12 = vld [vmem:[#allocation8 + $0x44] ss:$8 sps:$4 sm:$0xff]   ;;  %v1521_v14 = vld [vmem:[#allocation8 + $0x40] ss:$8 sps:$4 sm:$0xff]  }
  0x38   :  { %v1519_v13 = vld [vmem:[#allocation8 + $0x144] ss:$8 sps:$4 sm:$0xff]   ;;  %v1522_v15 = vld [vmem:[#allocation8 + $0x140] ss:$8 sps:$4 sm:$0xff]   ;;  %v1523_v16 = vld [vmem:[#allocation8 + $0x34] ss:$8 sps:$4 sm:$0xff]  }
  0x39   :  { %464 = vmatpush1.bf16.msra.mxu0 %v1509_v6  ;;  %v1525_v17 = vld [vmem:[#allocation8 + $0x134] ss:$8 sps:$4 sm:$0xff]   ;;  %v1527_v18 = vld [vmem:[#allocation8 + $0x30] ss:$8 sps:$4 sm:$0xff]   ;;  %v1529_v20 = vld [vmem:[#allocation8 + $0x24] ss:$8 sps:$4 sm:$0xff]  }
  0x3a   :  { %505 = vmatpush1.bf16.msra.mxu1 %v1510_v7  ;;  %465 = vmatprep.subr.bf16.mxu0 %v1511_v8  ;;  %v1528_v19 = vld [vmem:[#allocation8 + $0x130] ss:$8 sps:$4 sm:$0xff]   ;;  %v1531_v21 = vld [vmem:[#allocation8 + $0x124] ss:$8 sps:$4 sm:$0xff]   ;;  %v1533_v22 = vld [vmem:[#allocation8 + $0x20] ss:$8 sps:$4 sm:$0xff]  }
  0x3b   :  { %506 = vmatprep.subr.bf16.mxu1 %v1513_v9  ;;  %v1534_v23 = vld [vmem:[#allocation8 + $0x120] ss:$8 sps:$4 sm:$0xff]   ;;  %v1535_v24 = vld [vmem:[#allocation8 + $0x14] ss:$8 sps:$4 sm:$0xff]   ;;  %v1539_v26 = vld [vmem:[#allocation8 + $0x10] ss:$8 sps:$4 sm:$0xff]  }
  0x3c   :  { %v1537_v25 = vld [vmem:[#allocation8 + $0x114] ss:$8 sps:$4 sm:$0xff]   ;;  %v1540_v27 = vld [vmem:[#allocation8 + $0x110] ss:$8 sps:$4 sm:$0xff]   ;;  %v102_v28 = vld [vmem:[#allocation5 + $0x18] sm:$0xff]  ;;  %vm457_vm0 = vcmask 130048  }
  0x3d   :  { %466 = vmatpush1.bf16.msra.mxu0 %v1515_v10  ;;  %v1541_v29 = vld [vmem:[#allocation8 + $0x4] ss:$8 sps:$4 sm:$0xff]   ;;  %v106_v31 = vpack.c.bf16 %v102_v28, %v102_v28  ;;  %v1545_v32 = vld [vmem:[#allocation8] ss:$8 sps:$4 sm:$0xff]   ;;  %v1547_v34 = vld [vmem:[#allocation8 + $0xf4] ss:$8 sps:$4 sm:$0xff]  }
  0x3e   :  { %507 = vmatpush1.bf16.msra.mxu1 %v1516_v11  ;;  %467 = vmatprep.subr.bf16.mxu0 %v1517_v12  ;;  %v1543_v30 = vld [vmem:[#allocation8 + $0x104] ss:$8 sps:$4 sm:$0xff]   ;;  %v1546_v33 = vld [vmem:[#allocation8 + $0x100] ss:$8 sps:$4 sm:$0xff]   ;;  %v1551_v36 = vld [vmem:[#allocation8 + $0xf0] ss:$8 sps:$4 sm:$0xff]  }
  0x3f   :  { %508 = vmatprep.subr.bf16.mxu1 %v1519_v13  ;;  %1338 = vmatprep.mubr.msk.bf16.mxu1 %vm457_vm0, %v106_v31  ;;  %v1549_v35 = vld [vmem:[#allocation8 + $0x184] ss:$8 sps:$4 sm:$0xff]   ;;  %v1552_v37 = vld [vmem:[#allocation8 + $0x180] ss:$8 sps:$4 sm:$0xff]   ;;  %v1559_v44 = vld [vmem:[#allocation8 + $0xd4] ss:$8 sps:$4 sm:$0xff]  }
  0x40   :  { %v1553_v38 = vld [vmem:[#allocation8 + $0xe4] ss:$8 sps:$4 sm:$0xff]   ;;  %v1555_v42 = vld [vmem:[#allocation7 + $0x70] ss:$8 sps:$4 sm:$0xff]   ;;  %v1563_v45 = vld [vmem:[#allocation7 + $0x64] ss:$8 sps:$4 sm:$0xff]  }
  0x41   :  { %468 = vmatpush1.bf16.msra.mxu0 %v1521_v14  ;;  %v101_v39 = vld [vmem:[#allocation5 + $0x10] sm:$0xff]  ;;  %v1561_v46 = vld [vmem:[#allocation7 + $0x60] ss:$8 sps:$4 sm:$0xff]   ;;  %v1571_v53 = vld [vmem:[#allocation8 + $0xb4] ss:$8 sps:$4 sm:$0xff]   ;;  %vm1792_vm1 = vmmov 0  }
  0x42   :  { %509 = vmatpush1.bf16.msra.mxu1 %v1522_v15  ;;  %469 = vmatprep.subr.bf16.mxu0 %v1523_v16  ;;  %v1557_v40 = vld [vmem:[#allocation7 + $0x74] ss:$8 sps:$4 sm:$0xff]   ;;  %v105_v41 = vpack.c.bf16 %v101_v39, %v101_v39  ;;  %v1558_v43 = vld [vmem:[#allocation8 + $0xe0] ss:$8 sps:$4 sm:$0xff]   ;;  %v1564_v47 = vld [vmem:[#allocation8 + $0xd0] ss:$8 sps:$4 sm:$0xff]  }
  0x43   :  { %510 = vmatprep.subr.bf16.mxu1 %v1525_v17  ;;  %v1565_v48 = vld [vmem:[#allocation8 + $0xc4] ss:$8 sps:$4 sm:$0xff]   ;;  %v1567_v50 = vld [vmem:[#allocation7 + $0x50] ss:$8 sps:$4 sm:$0xff]   ;;  %v100_v52 = vld [vmem:[#allocation5 + $0x8] sm:$0xff]  ;;  %vm1225_vm2 = vcmask 523264  }
  0x44   :  { %v1569_v49 = vld [vmem:[#allocation7 + $0x54] ss:$8 sps:$4 sm:$0xff]   ;;  %v1570_v51 = vld [vmem:[#allocation8 + $0xc0] ss:$8 sps:$4 sm:$0xff]   ;;  %v104_v54 = vpack.c.bf16 %v100_v52, %v100_v52  ;;  %v1575_v55 = vld [vmem:[#allocation7 + $0x44] ss:$8 sps:$4 sm:$0xff]  }
  0x45   :  { %470 = vmatpush1.bf16.msra.mxu0 %v1527_v18  ;;  %v1573_v56 = vld [vmem:[#allocation7 + $0x40] ss:$8 sps:$4 sm:$0xff]   ;;  %v1577_v58 = vld [vmem:[#allocation8 + $0xa4] ss:$8 sps:$4 sm:$0xff]   ;;  %v1579_v60 = vld [vmem:[#allocation7 + $0x30] ss:$8 sps:$4 sm:$0xff]  }
  0x46   :  { %511 = vmatpush1.bf16.msra.mxu1 %v1528_v19  ;;  %471 = vmatprep.subr.bf16.mxu0 %v1529_v20  ;;  %v1576_v57 = vld [vmem:[#allocation8 + $0xb0] ss:$8 sps:$4 sm:$0xff]   ;;  %v1581_v59 = vld [vmem:[#allocation7 + $0x34] ss:$8 sps:$4 sm:$0xff]   ;;  %v1582_v61 = vld [vmem:[#allocation8 + $0xa0] ss:$8 sps:$4 sm:$0xff]  }
  0x47   :  { %512 = vmatprep.subr.bf16.mxu1 %v1531_v21  ;;  %493 = vmatprep.mubr.bf16.mxu0 %v104_v54  ;;  %v1583_v62 = vld [vmem:[#allocation8 + $0x94] ss:$8 sps:$4 sm:$0xff]   ;;  %v1585_v0 = vld [vmem:[#allocation7 + $0x20] ss:$8 sps:$4 sm:$0xff]   ;;  %v1589_v2 = vld [vmem:[#allocation8 + $0x84] ss:$8 sps:$4 sm:$0xff]  }
  0x48   :  { %v1587_v63 = vld [vmem:[#allocation7 + $0x24] ss:$8 sps:$4 sm:$0xff]   ;;  %v1588_v1 = vld [vmem:[#allocation8 + $0x90] ss:$8 sps:$4 sm:$0xff]   ;;  %v1593_v3 = vld [vmem:[#allocation7 + $0x14] ss:$8 sps:$4 sm:$0xff]  }
  0x49   :  { %472 = vmatpush1.bf16.msra.mxu0 %v1533_v22  ;;  %v1591_v4 = vld [vmem:[#allocation7 + $0x10] ss:$8 sps:$4 sm:$0xff]   ;;  %v99_v6 = vld [vmem:[#allocation5] sm:$0xff]  ;;  %v1600_v8 = vld [vmem:[#allocation7 + $0x174] ss:$8 sps:$4 sm:$0xff]   ;;  %s1793_s29 = smov [#allocation10]  }
  0x4a   :  { %513 = vmatpush1.bf16.msra.mxu1 %v1534_v23  ;;  %473 = vmatprep.subr.bf16.mxu0 %v1535_v24  ;;  %v1594_v5 = vld [vmem:[#allocation8 + $0x80] ss:$8 sps:$4 sm:$0xff]   ;;  %v1597_v7 = vld [vmem:[#allocation7 + $0x4] ss:$8 sps:$4 sm:$0xff]   ;;  %v103_v9 = vpack.c.bf16 %v99_v6, %v99_v6  ;;  %v1595_v10 = vld [vmem:[#allocation7] ss:$8 sps:$4 sm:$0xff]  }
  0x4b   :  { %514 = vmatprep.subr.bf16.mxu1 %v1537_v25  ;;  %v1598_v11 = vld [vmem:[#allocation7 + $0x170] ss:$8 sps:$4 sm:$0xff]   ;;  %v1603_v12 = vld [vmem:[#allocation7 + $0xf4] ss:$8 sps:$4 sm:$0xff]   ;;  %v1606_v13 = vld [vmem:[#allocation7 + $0x164] ss:$8 sps:$4 sm:$0xff]  }
  0x4c   :  { %v1601_v14 = vld [vmem:[#allocation7 + $0xf0] ss:$8 sps:$4 sm:$0xff]   ;;  %v1604_v15 = vld [vmem:[#allocation7 + $0x160] ss:$8 sps:$4 sm:$0xff]   ;;  %v1609_v16 = vld [vmem:[#allocation7 + $0xe4] ss:$8 sps:$4 sm:$0xff]  }
  0x4d   :  { %474 = vmatpush1.bf16.msra.mxu0 %v1539_v26  ;;  %v92_v17 = vld [vmem:[#allocation2 + $0x8] sm:$0xff]  ;;  %v94_v18 = vld [vmem:[#allocation2 + $0x18] sm:$0xff]  ;;  %v1651_v54 = vld [vmem:[%s1986_s5 + $0x70] sm:$0xff]   ;;  %vm1269_vm3 = vcmask 39936  }
  0x4e   :  { %515 = vmatpush1.bf16.msra.mxu1 %v1540_v27  ;;  %475 = vmatprep.subr.bf16.mxu0 %v1541_v29  ;;  %v1612_v19 = vld [vmem:[#allocation7 + $0x154] ss:$8 sps:$4 sm:$0xff]   ;;  %v96_v20 = vpack.c.bf16 %v92_v17, %v92_v17  ;;  %v98_v21 = vpack.c.bf16 %v94_v18, %v94_v18  ;;  %v1607_v22 = vld [vmem:[#allocation7 + $0xe0] ss:$8 sps:$4 sm:$0xff]   ;;  %v1610_v23 = vld [vmem:[#allocation7 + $0x150] ss:$8 sps:$4 sm:$0xff]   ;;  %v880_v18 = vlaneseq }
  0x4f   :  { %516 = vmatprep.subr.bf16.mxu1 %v1543_v30  ;;  %v1615_v24 = vld [vmem:[#allocation7 + $0xd4] ss:$8 sps:$4 sm:$0xff]   ;;  %v1618_v25 = vld [vmem:[#allocation7 + $0x144] ss:$8 sps:$4 sm:$0xff]   ;;  %v1613_v26 = vld [vmem:[#allocation7 + $0xd0] ss:$8 sps:$4 sm:$0xff]  }
  0x50   :  { %v1616_v27 = vld [vmem:[#allocation7 + $0x140] ss:$8 sps:$4 sm:$0xff]   ;;  %v1621_v28 = vld [vmem:[#allocation7 + $0xc4] ss:$8 sps:$4 sm:$0xff]   ;;  %v1624_v29 = vld [vmem:[#allocation7 + $0x134] ss:$8 sps:$4 sm:$0xff]  }
  0x51   :  { %476 = vmatpush1.bf16.msra.mxu0 %v1545_v32  ;;  %v1619_v30 = vld [vmem:[#allocation7 + $0xc0] ss:$8 sps:$4 sm:$0xff]   ;;  %v1622_v31 = vld [vmem:[#allocation7 + $0x130] ss:$8 sps:$4 sm:$0xff]   ;;  %v1627_v32 = vld [vmem:[#allocation7 + $0xb4] ss:$8 sps:$4 sm:$0xff]  }
  0x52   :  { %517 = vmatpush1.bf16.msra.mxu1 %v1546_v33  ;;  %477 = vmatprep.subr.bf16.mxu0 %v1547_v34  ;;  %v1630_v33 = vld [vmem:[#allocation7 + $0x124] ss:$8 sps:$4 sm:$0xff]   ;;  %v1625_v34 = vld [vmem:[#allocation7 + $0xb0] ss:$8 sps:$4 sm:$0xff]  }
  0x53   :  { %532 = vmatprep.subr.bf16.mxu1 %v1549_v35  ;;  %v1628_v35 = vld [vmem:[#allocation7 + $0x120] ss:$8 sps:$4 sm:$0xff]   ;;  %v1634_v39 = vld [vmem:[#allocation7 + $0x110] ss:$8 sps:$4 sm:$0xff]  }
  0x54   :  { %v1649_v52 = vld [vmem:[%s1986_s5 + $0x78] sm:$0xff]   ;;  %v1666_v6 = vld [vmem:[%s1988_s7 + $0x30] sm:$0xff]  }
  0x55   :  { %478 = vmatpush2.bf16.msra.mxu0 %v1551_v36  ;;  %v1633_v36 = vld [vmem:[#allocation7 + $0xa4] ss:$8 sps:$4 sm:$0xff]  }
  0x56   :  { %533 = vmatpush2.bf16.msra.mxu1 %v1552_v37  ;;  %479 = vmatprep.subr.bf16.mxu0 %v1553_v38  ;;  %v1636_v37 = vld [vmem:[#allocation7 + $0x114] ss:$8 sps:$4 sm:$0xff]   ;;  %v1631_v38 = vld [vmem:[#allocation7 + $0xa0] ss:$8 sps:$4 sm:$0xff]  }
  0x57   :  { %796 = vmatprep.subr.bf16.mxu1 %v1557_v40  ;;  %v1639_v40 = vld [vmem:[#allocation7 + $0x94] ss:$8 sps:$4 sm:$0xff]  }
  0x59   :  { %535 = vmatmul.mubr.bf16.vlgmr.msra.gmra.mxu1 %v105_v41  ;;  %480 = vmatpush2.bf16.msra.mxu0 %v1558_v43  ;;  %v1642_v41 = vld [vmem:[#allocation7 + $0x104] ss:$8 sps:$4 sm:$0xff]   ;;  %v1640_v43 = vld [vmem:[#allocation7 + $0x100] ss:$8 sps:$4 sm:$0xff]  }
  0x5a   :  { %797 = vmatpush1.bf16.msra.mxu1 %v1555_v42  ;;  %481 = vmatprep.subr.bf16.mxu0 %v1559_v44  ;;  %v1637_v42 = vld [vmem:[#allocation7 + $0x90] ss:$8 sps:$4 sm:$0xff]   ;;  %v1645_v44 = vld [vmem:[#allocation7 + $0x84] ss:$8 sps:$4 sm:$0xff]  }
  0x5b   :  { %798 = vmatprep.subr.bf16.mxu1 %v1563_v45  ;;  %828 = vmatprep.mubr.bf16.mxu1 %v96_v20  ;;  %v1648_v45 = vld [vmem:[#allocation7 + $0x184] ss:$8 sps:$4 sm:$0xff]  }
  0x5d   :  { %482 = vmatpush2.bf16.msra.mxu0 %v1564_v47  ;;  %v1646_v47 = vld [vmem:[#allocation7 + $0x180] ss:$8 sps:$4 sm:$0xff]  }
  0x5e   :  { %799 = vmatpush1.bf16.msra.mxu1 %v1561_v46  ;;  %483 = vmatprep.subr.bf16.mxu0 %v1565_v48  ;;  %v1643_v46 = vld [vmem:[#allocation7 + $0x80] ss:$8 sps:$4 sm:$0xff]  }
  0x5f   :  { %800 = vmatprep.subr.bf16.mxu1 %v1569_v49  ;;  %v91_v48 = vld [vmem:[#allocation2] sm:$0xff]  ;;  %v93_v49 = vld [vmem:[#allocation2 + $0x10] sm:$0xff] }
  0x61   :  { %484 = vmatpush2.bf16.msra.mxu0 %v1570_v51  ;;  %v97_v51 = vpack.c.bf16 %v93_v49, %v93_v49  ;;  %v1674_v49 = vld [vmem:[%s1990_s9 + $0x10] sm:$0xff]  }
  0x62   :  { %801 = vmatpush1.bf16.msra.mxu1 %v1567_v50  ;;  %485 = vmatprep.subr.bf16.mxu0 %v1571_v53  ;;  %v95_v50 = vpack.c.bf16 %v91_v48, %v91_v48  ;;  %v1650_v53 = vld [vmem:[%s1986_s5 + $0x38] sm:$0xff]  }
  0x63   :  { %802 = vmatprep.subr.bf16.mxu1 %v1575_v55  ;;  %v1652_v55 = vld [vmem:[%s1986_s5 + $0x30] sm:$0xff]   ;;  %v1673_v48 = vld [vmem:[%s1990_s9 + $0x18] sm:$0xff]  }
  0x65   :  { %486 = vmatpush2.bf16.msra.mxu0 %v1576_v57  ;;  %v1654_v57 = vld [vmem:[%s1986_s5 + $0x28] sm:$0xff]  }
  0x66   :  { %803 = vmatpush1.bf16.msra.mxu1 %v1573_v56  ;;  %487 = vmatprep.subr.bf16.mxu0 %v1577_v58  ;;  %v1653_v56 = vld [vmem:[%s1986_s5 + $0x68] sm:$0xff]   ;;  %v1655_v58 = vld [vmem:[%s1986_s5 + $0x60] sm:$0xff]  }
  0x67   :  { %804 = vmatprep.subr.bf16.mxu1 %v1581_v59  ;;  %v1656_v59 = vld [vmem:[%s1986_s5 + $0x20] sm:$0xff]  }
  0x69   :  { %488 = vmatpush2.bf16.msra.mxu0 %v1582_v61  ;;  %v1658_v61 = vld [vmem:[%s1986_s5 + $0x18] sm:$0xff]  }
  0x6a   :  { %805 = vmatpush1.bf16.msra.mxu1 %v1579_v60  ;;  %489 = vmatprep.subr.bf16.mxu0 %v1583_v62  ;;  %v1657_v60 = vld [vmem:[%s1986_s5 + $0x58] sm:$0xff]   ;;  %v1659_v62 = vld [vmem:[%s1986_s5 + $0x50] sm:$0xff]  }
  0x6b   :  { %806 = vmatprep.subr.bf16.mxu1 %v1587_v63  ;;  %v1660_v63 = vld [vmem:[%s1986_s5 + $0x10] sm:$0xff]  }
  0x6d   :  { %490 = vmatpush2.bf16.msra.mxu0 %v1588_v1  ;;  %v1662_v1 = vld [vmem:[%s1986_s5 + $0x8] sm:$0xff]  }
  0x6e   :  { %807 = vmatpush1.bf16.msra.mxu1 %v1585_v0  ;;  %491 = vmatprep.subr.bf16.mxu0 %v1589_v2  ;;  %v1661_v0 = vld [vmem:[%s1986_s5 + $0x48] sm:$0xff]   ;;  %v1663_v2 = vld [vmem:[%s1986_s5 + $0x40] sm:$0xff]  }
  0x6f   :  { %808 = vmatprep.subr.bf16.mxu1 %v1593_v3  ;;  %v1664_v3 = vld [vmem:[%s1986_s5] sm:$0xff]  }
  0x71   :  { %492 = vmatpush2.bf16.msra.mxu0 %v1594_v5  ;;  %v1791_v5 = vmov 0.0  }
  0x72   :  { %809 = vmatpush1.bf16.msra.mxu1 %v1591_v4  ;;  %837 = vmatprep.subr.bf16.mxu0 %v1600_v8  ;;  %v1665_v4 = vld [vmem:[%s1988_s7 + $0x38] sm:$0xff]   ;;  %v1668_v8 = vld [vmem:[%s1988_s7 + $0x20] sm:$0xff]  }
  0x73   :  { %810 = vmatprep.subr.bf16.mxu1 %v1597_v7  ;;  %v1667_v7 = vld [vmem:[%s1988_s7 + $0x28] sm:$0xff]  }
  0x74   :  { %494 = vmatmul.mubr.bf16.vlgmr.msra.gmra.mxu0 %v103_v9  ;;  %v1669_v9 = vld [vmem:[%s1988_s7 + $0x18] sm:$0xff]  }
  0x75   :  { %838 = vmatpush1.bf16.msra.mxu0 %v1598_v11  ;;  %1389 = vmatprep.mubr.msk.bf16.mxu0 %vm457_vm0, %v98_v21  ;;  %v878_v21 = vld [vmem:[%s1985_s4] sm:$0x3] }
  0x76   :  { %811 = vmatpush1.bf16.msra.mxu1 %v1595_v10  ;;  %839 = vmatprep.subr.bf16.mxu0 %v1606_v13 }
  0x77   :  { %812 = vmatprep.subr.bf16.mxu1 %v1603_v12 }
  0x79   :  { %840 = vmatpush1.bf16.msra.mxu0 %v1604_v15 }
  0x7a   :  { %813 = vmatpush2.bf16.msra.mxu1 %v1601_v14  ;;  %841 = vmatprep.subr.bf16.mxu0 %v1612_v19  ;;  %v881_v19 = vshrl.u32 %v880_v18, 7 }
  0x7b   :  { %814 = vmatprep.subr.bf16.mxu1 %v1609_v16 }
  0x7c   :  { %v882_v20 = vsub.s32 0, %v881_v19 }
  0x7d   :  { %842 = vmatpush1.bf16.msra.mxu0 %v1610_v23  ;;  %v886_v23 = vsub.s32 1, %v881_v19 }
  0x7e   :  { %815 = vmatpush2.bf16.msra.mxu1 %v1607_v22  ;;  %843 = vmatprep.subr.bf16.mxu0 %v1618_v25 }
  0x7f   :  { %816 = vmatprep.subr.bf16.mxu1 %v1615_v24 }
  0x81   :  { %844 = vmatpush1.bf16.msra.mxu0 %v1616_v27 }
  0x82   :  { %817 = vmatpush2.bf16.msra.mxu1 %v1613_v26  ;;  %845 = vmatprep.subr.bf16.mxu0 %v1624_v29 }
  0x83   :  { %818 = vmatprep.subr.bf16.mxu1 %v1621_v28  ;;  %v883_v28 = vrot.slane %v878_v21, %v882_v20 }
  0x85   :  { %846 = vmatpush1.bf16.msra.mxu0 %v1622_v31 }
  0x86   :  { %819 = vmatpush2.bf16.msra.mxu1 %v1619_v30  ;;  %847 = vmatprep.subr.bf16.mxu0 %v1630_v33  ;;  %v887_v33 = vrot.slane %v878_v21, %v886_v23 }
  0x87   :  { %820 = vmatprep.subr.bf16.mxu1 %v1627_v32 }
  0x89   :  { %848 = vmatpush1.bf16.msra.mxu0 %v1628_v35 }
  0x8a   :  { %821 = vmatpush2.bf16.msra.mxu1 %v1625_v34  ;;  %849 = vmatprep.subr.bf16.mxu0 %v1636_v37 }
  0x8b   :  { %822 = vmatprep.subr.bf16.mxu1 %v1633_v36 }
  0x8d   :  { %850 = vmatpush1.bf16.msra.mxu0 %v1634_v39 }
  0x8e   :  { %823 = vmatpush2.bf16.msra.mxu1 %v1631_v38  ;;  %851 = vmatprep.subr.bf16.mxu0 %v1642_v41 }
  0x8f   :  { %824 = vmatprep.subr.bf16.mxu1 %v1639_v40 }
  0x91   :  { %852 = vmatpush1.bf16.msra.mxu0 %v1640_v43 }
  0x92   :  { %825 = vmatpush2.bf16.msra.mxu1 %v1637_v42  ;;  %867 = vmatprep.subr.bf16.mxu0 %v1648_v45  ;;  %v1670_v45 = vld [vmem:[%s1988_s7 + $0x10] sm:$0xff]  }
  0x93   :  { %826 = vmatprep.subr.bf16.mxu1 %v1645_v44 }
  0x95   :  { %868 = vmatpush2.bf16.msra.mxu0 %v1646_v47  ;;  %v1672_v47 = vld [vmem:[%s1988_s7] sm:$0xff]  }
  0x96   :  { %827 = vmatpush2.bf16.msra.mxu1 %v1643_v46  ;;  %1422 = vmatprep.subr.bf16.mxu0 %v1649_v52  ;;  %v1671_v46 = vld [vmem:[%s1988_s7 + $0x8] sm:$0xff]  }
  0x97   :  { %1458 = vmatprep.subr.bf16.mxu1 %v1791_v5 }
  0x98   :  { %870 = vmatmul.mubr.bf16.vlgmr.msra.gmra.mxu0 %v97_v51  ;;  %v1390_v51 = vld [vmem:[%s1987_s6] ss:$0 sm:$0xff] }
  0x99   :  { %829 = vmatmul.mubr.bf16.vlgmr.msra.gmra.mxu1 %v95_v50  ;;  %1423 = vmatpush3.bf16.msra.mxu0 %v1650_v53 }
  0x9a   :  { %1424 = vmatprep.subr.bf16.mxu0 %v1651_v54  ;;  %1459 = vmatpush3.bf16.msra.mxu1 %v1665_v4 }
  0x9b   :  { %1460 = vmatprep.subr.bf16.mxu1 %v1791_v5  ;;  %1474 = vmatprep.mubr.msk.bf16.mxu1 %vm1792_vm1, %v1791_v5 }
  0x9d   :  { %1425 = vmatpush3.bf16.msra.mxu0 %v1652_v55 }
  0x9e   :  { %1426 = vmatprep.subr.bf16.mxu0 %v1653_v56  ;;  %1461 = vmatpush3.bf16.msra.mxu1 %v1666_v6 }
  0x9f   :  { %1462 = vmatprep.subr.bf16.mxu1 %v1791_v5 }
  0xa1   :  { %1427 = vmatpush3.bf16.msra.mxu0 %v1654_v57 }
  0xa2   :  { %1428 = vmatprep.subr.bf16.mxu0 %v1655_v58  ;;  %1463 = vmatpush3.bf16.msra.mxu1 %v1667_v7 }
  0xa3   :  { %1464 = vmatprep.subr.bf16.mxu1 %v1791_v5 }
  0xa5   :  { %1429 = vmatpush3.bf16.msra.mxu0 %v1656_v59  ;;  %v1675_v59 = vld [vmem:[%s1990_s9 + $0x8] sm:$0xff]  }
  0xa6   :  { %1430 = vmatprep.subr.bf16.mxu0 %v1657_v60  ;;  %1465 = vmatpush3.bf16.msra.mxu1 %v1668_v8  ;;  %v1676_v60 = vld [vmem:[%s1990_s9] sm:$0xff]   ;;  %s1277_s9 = sshll.u32 %s1793_s29, 4  ;;  %s1278_s9 = int_to_ptr.vmem [resolvable:$true] %s1277_s9 }
  0xa7   :  { %1466 = vmatprep.subr.bf16.mxu1 %v1791_v5  ;;  %p1762_p7 = scmp.lt.s32.totalorder %s1278_s9, %s1278_s9 }
  0xa9   :  { %1431 = vmatpush3.bf16.msra.mxu0 %v1658_v61  ;;  %v1407_v61 = vld [vmem:[%s1989_s8] ss:$0 sm:$0xff]  ;;  %s1757_s8 = scalar_lea.vmem %s1278_s9, 128 }
  0xaa   :  { %1432 = vmatprep.subr.bf16.mxu0 %v1659_v62  ;;  %1467 = vmatpush3.bf16.msra.mxu1 %v1669_v9  ;;  %p1758_p6 = scmp.ne.s32.totalorder %s1278_s9, %s1757_s8  ;;  %p1763_p8 = scmp.lt.s32.totalorder %s1757_s8, %s1757_s8 }
  0xab   :  { %1468 = vmatprep.subr.bf16.mxu1 %v1791_v5 }
  0xac   :  { %p1764_p9 = por %p1763_p8, %p1762_p7 }
  0xad   :  { %1433 = vmatpush3.bf16.msra.mxu0 %v1660_v63 }
  0xae   :  { %1434 = vmatprep.subr.bf16.mxu0 %v1661_v0  ;;  %1469 = vmatpush3.bf16.msra.mxu1 %v1670_v45  ;;  %p1765_p10 = pnand %p1764_p9, %p1758_p6 }
  0xaf   :  { %1470 = vmatprep.subr.bf16.mxu1 %v1791_v5 }
  0xb1   :  { %1435 = vmatpush3.bf16.msra.mxu0 %v1662_v1 }
  0xb2   :  { %1436 = vmatprep.subr.bf16.mxu0 %v1663_v2  ;;  %1471 = vmatpush3.bf16.msra.mxu1 %v1671_v46 }
  0xb3   :  { %1472 = vmatprep.subr.bf16.mxu1 %v1791_v5 }
  0xb5   :  { %1437 = vmatpush3.bf16.msra.mxu0 %v1664_v3 }
  0xb6   :  { %1478 = vmatprep.subr.bf16.mxu0 %v1791_v5  ;;  %1473 = vmatpush3.bf16.msra.mxu1 %v1672_v47 }
 0x119   :  { %v536_v10 = vpop.f32.mrf.mxu1 }
 0x11b   :  { %v538_v11 = vpop.f32.mrf.mxu1 }
 0x11d   :  { %v540_v12 = vpop.f32.mrf.mxu1 }
 0x11f   :  { %v541_v13 = vpop.f32.mrf.mxu1 }
 0x134   :  { %v495_v14 = vpop.f32.mrf.mxu0 }
 0x135   :  { %v537_v22 = vadd.f32 %v536_v10, %v495_v14 }
 0x136   :  { %v497_v15 = vpop.f32.mrf.mxu0 }
 0x137   :  { %v539_v26 = vadd.f32 %v538_v11, %v497_v15 }
 0x138   :  { %v499_v16 = vpop.f32.mrf.mxu0 }
 0x13a   :  { %v500_v17 = vpop.f32.mrf.mxu0 }
 0x158   :  { %v871_v25 = vpop.f32.mrf.mxu0 }
 0x159   :  { %v830_v24 = vpop.f32.mrf.mxu1 }
 0x15a   :  { %v831_v27 = vadd.f32 %v830_v24, %v537_v22  ;;  %v873_v30 = vpop.f32.mrf.mxu0 }
 0x15b   :  { %v832_v29 = vpop.f32.mrf.mxu1 }
 0x15c   :  { %v872_v31 = vadd.f32 %v871_v25, %v831_v27  ;;  %v833_v32 = vadd.f32 %v832_v29, %v539_v26  ;;  %v875_v35 = vpop.f32.mrf.mxu0 }
 0x15d   :  { %v834_v34 = vpop.f32.mrf.mxu1 }
 0x15e   :  { %v890_v36 = vadd.f32 %v883_v28, %v872_v31  ;;  %v874_v37 = vadd.f32 %v873_v30, %v833_v32  ;;  %v876_v39 = vpop.f32.mrf.mxu0 }
 0x15f   :  { %v835_v38 = vpop.f32.mrf.mxu1 }
 0x160   :  { %v891_v40 = vadd.f32 %v887_v33, %v874_v37  ;;  %v892_v41 = vmax.f32 %v890_v36, 0.0 }
 0x162   :  { %v893_v42 = vmax.f32 %v891_v40, 0.0  ;;  %v894_v44 = vpack.c.bf16 %v892_v41, %v892_v41 }
 0x164   :  { %v895_v43 = vpack.c.bf16 %v893_v42, %v893_v42 }
 0x166   :  { %1063 = vmatprep.mubr.bf16.mxu0 %v895_v43 }
 0x167   :  { %1064 = vmatmul.mubr.bf16.vlgmr.msra.gmra.mxu0 %v894_v44 }
 0x168   :  { %1486 = vmatprep.mubr.msk.bf16.mxu0 %vm1792_vm1, %v1791_v5  ;;  %1479 = vmatpush3.bf16.msra.mxu0 %v1673_v48 }
 0x169   :  { %1480 = vmatprep.subr.bf16.mxu0 %v1791_v5 }
 0x16c   :  { %1481 = vmatpush3.bf16.msra.mxu0 %v1674_v49 }
 0x16d   :  { %1482 = vmatprep.subr.bf16.mxu0 %v1791_v5 }
 0x170   :  { %1483 = vmatpush3.bf16.msra.mxu0 %v1675_v59 }
 0x171   :  { %1484 = vmatprep.subr.bf16.mxu0 %v1791_v5  ;;  %v1416_v5 = vld [vmem:[%s1991_s10] ss:$0 sm:$0xff] }
 0x174   :  { %1485 = vmatpush3.bf16.msra.mxu0 %v1676_v60 }
 0x227   :  { %v1438_v50 = vpop.f32.mrf.mxu0 }
 0x229   :  { %v1439_v52 = vpop.f32.mrf.mxu0 }
 0x22a   :  { %v1440_v53 = vadd.f32 %v1439_v52, %v1438_v50 }
 0x22b   :  { %v1441_v54 = vpop.f32.mrf.mxu0 }
 0x22c   :  { %v1066_v55 = vadd.f32 %v1440_v53, %v1390_v51 }
 0x22d   :  { %v1442_v56 = vpop.f32.mrf.mxu0 }
 0x22e   :  { %v1071_v57 = vmax.f32 %v1066_v55, 0.0 }
 0x230   :  { %v1072_v58 = vpack.c.bf16 %v1071_v57, %v1071_v57 }
 0x232   :  { %1475 = vmatmul.mubr.bf16.vlgmr.msra.gmra.mxu1 %v1072_v58 }
 0x2f2   :  { %v1178_v62 = vpop.f32.mrf.mxu1 }
 0x2f3   :  { %v1179_v63 = vadd.f32 %v1407_v61, %v1178_v62 }
 0x2f4   :  { %v1476_v0 = vpop.f32.mrf.mxu1 }
 0x2f5   :  { %v1184_v1 = vmax.f32 %v1179_v63, 0.0 }
 0x2f6   :  { %v1181_v2 = vpop.f32.mrf.mxu1 }
 0x2f7   :  { %v1185_v3 = vpack.c.bf16 %v1184_v1, %v1184_v1 }
 0x2f8   :  { %v1477_v4 = vpop.f32.mrf.mxu1 }
 0x2f9   :  { %1487 = vmatmul.mubr.msk.bf16.vlgmr.msra.gmra.mxu0 %vm1225_vm2, %v1185_v3 }
 0x3b9   :  { %v1263_v6 = vpop.f32.mrf.mxu0 }
 0x3ba   :  { %v1264_v7 = vadd.f32 %v1416_v5, %v1263_v6 }
 0x3bb   :  { %v1488_v8 = vpop.f32.mrf.mxu0 }
 0x3bc   :  { %1270 = vst.msk [vmem:[#allocation10] sm:$0xff] %vm1269_vm3, %v1264_v7 }
 0x3bd   :  { %v1266_v9 = vpop.f32.mrf.mxu0 }
 0x3be   :  { %1768 = shalt.err (!%p1765_p10)
}
 0x3bf   :  { %1280 = dma.vmem_to_hbm [thread:$0]  %s1278_s9, 128, %s1992_s11, [#allocation4]   ;;  %v1489_v10 = vpop.f32.mrf.mxu0 }
 0x3c0   :  { %1783 = dma.done.wait [#allocation4], 128  }
 0x3c1   :  { %1784 = vsyncadd [#allocation4], 4294967168 }
 0x3c2   :  { %1284 = vsyncpa [#allocation3], 1 }
 0x3c3   :  { %1285 = vsyncpa [#allocation6], 1 }
 0x3c4   :  { %1286 = vsyncpa [#allocation9], 1 }
 0x3c5   :  { %1287 = vsyncpa [#allocation4], 1 }

</bundles_post_ra>
